<compile_context>
chip_gen: v7x
topology: tpu7x:2x2x1
jax: 0.10.0
libtpu: 0.0.40
codegen_flags: <defaults>
</compile_context>

<pallas_src>
import math
import numpy as np
import jax
import jax.numpy as jnp
from jax import lax
from jax.experimental import pallas as pl
from jax.experimental.pallas import tpu as pltpu


_NEG_BIG = -1e30  # mask value for padded key columns (finite: no -inf arithmetic)


def _make_attn_kernel(inv_scale: float, use_bf16_mxu: bool):
    """Kernel over one (BB, TQ) tile: QK^T -> +bias -> *inv_scale -> softmax -> @V."""

    def attn_kernel(bias_ref, q_ref, k_ref, v_ref, ctx_ref, attn_ref):
        q = q_ref[...]            # (BB, TQ,  D)
        k = k_ref[...]            # (BB, Lkp, D)
        v = v_ref[...]            # (BB, Lkp, Dv)
        bias = bias_ref[...]      # (1, Lkp)  pre-scaled TUPE bias; _NEG_BIG in pad cols

        if use_bf16_mxu:          # v6e/v7x fast path: bf16 MXU inputs, f32 accumulation
            q = q.astype(jnp.bfloat16)
            k = k.astype(jnp.bfloat16)

        # scores = q @ k^T, contracting the feature dim directly (no explicit .T).
        s = lax.dot_general(q, k, (((2,), (2,)), ((0,), (0,))),
                            preferred_element_type=jnp.float32)        # (BB, TQ, Lkp)

        # (scores + pe_bias)/scale  ==  scores*inv_scale + (pe_bias*inv_scale)
        s = s * inv_scale + bias[None, :, :]

        # Numerically-stable softmax; reciprocal on the EUP slot (approx) instead of
        # a full-tile VALU divide.
        m = jnp.max(s, axis=-1, keepdims=True)
        e = jnp.exp(s - m)
        denom = jnp.sum(e, axis=-1, keepdims=True)
        p = e * pl.reciprocal(denom, approx=True)

        # TODO(synk): dropout is identity (eval mode); training-mode dropout not implemented.
        attn_ref[...] = p.astype(attn_ref.dtype)

        pv = p.astype(jnp.bfloat16) if use_bf16_mxu else p
        vv = v.astype(jnp.bfloat16) if use_bf16_mxu else v
        ctx = lax.dot_general(pv, vv, (((2,), (1,)), ((0,), (0,))),
                              preferred_element_type=jnp.float32)      # (BB, TQ, Dv)
        ctx_ref[...] = ctx.astype(ctx_ref.dtype)

    return attn_kernel


def _choose_blocks(B, Lq, Lk_pad, D, Dv):
    """Pick (batch block BB, query tile TQ) against an explicit VMEM budget."""

    def step_bytes(bb, tq):
        # double-buffered f32 tiles: q, k, v, attn, ctx (+ shared bias)
        elems = bb * (tq * D + Lk_pad * (D + Dv) + tq * (Lk_pad + Dv)) + Lk_pad
        return 2 * 4 * elems

    # Tiny problems: collapse everything into one grid step (grid steps are a
    # sequential ~0.35 us loop on a single TensorCore).
    if B * Lq <= 512 and step_bytes(B, Lq) <= 4 * 1024 * 1024:
        return B, Lq

    # General case: one batch element per step, tile Lq.
    # Budget ~24 MiB — safe on v7x (64 MiB physical / 32 MiB scoped VMEM).
    if Lq <= 8:
        return 1, Lq
    tq = min((Lq // 8) * 8, 256)
    while tq > 8 and step_bytes(1, tq) > 24 * 1024 * 1024:
        tq //= 2
    return 1, tq


def mha_tupe_forward(q, k, v, W_q, W_k, pe, *, d_k, d_v, n_heads, use_bf16_mxu=False):
    """Forward of MultiHeadAttention_TUPE_parent (TUPE=True, pe_mode='learned', attn_mask=None)."""
    B, Lq, D = q.shape
    Lk = k.shape[1]
    Dv = v.shape[2]
    scale = float(np.sqrt(2 * d_k))          # TUPE scale
    inv_scale = 1.0 / scale

    # ---- TUPE positional bias (tiny, parameter-only compute — JAX glue) ----
    q_pe = jnp.ones((1, D), jnp.float32) @ W_q.T      # nn.Linear: x @ W^T
    k_pe = pe[:Lk] @ W_k.T                            # (Lk, D)
    pe_bias = (q_pe @ k_pe.T) * inv_scale             # (1, Lk), pre-scaled by 1/sqrt(2*d_k)

    # ---- Lane-dense attn output: pad Lk to a multiple of 128, mask padded cols ----
    Lk_pad = ((Lk + 127) // 128) * 128
    pad = Lk_pad - Lk
    if pad:
        k = jnp.pad(k, ((0, 0), (0, pad), (0, 0)))
        v = jnp.pad(v, ((0, 0), (0, pad), (0, 0)))
        pe_bias = jnp.pad(pe_bias, ((0, 0), (0, pad)), constant_values=_NEG_BIG)

    BB, TQ = _choose_blocks(B, Lq, Lk_pad, D, Dv)
    grid = (B // BB, pl.cdiv(Lq, TQ))

    kernel = _make_attn_kernel(inv_scale, use_bf16_mxu)

    context, attn = pl.pallas_call(
        kernel,
        out_shape=(
            jax.ShapeDtypeStruct((B, Lq, Dv), jnp.float32),
            jax.ShapeDtypeStruct((B, Lq, Lk_pad), jnp.float32),
        ),
        grid_spec=pltpu.PrefetchScalarGridSpec(
            num_scalar_prefetch=0,
            grid=grid,
            in_specs=[
                pl.BlockSpec((1, Lk_pad), lambda b, i: (0, 0)),          # TUPE bias (shared)
                pl.BlockSpec((BB, TQ, D), lambda b, i: (b, i, 0)),       # q tile
                pl.BlockSpec((BB, Lk_pad, D), lambda b, i: (b, 0, 0)),   # k (resident over Lq tiles)
                pl.BlockSpec((BB, Lk_pad, Dv), lambda b, i: (b, 0, 0)),  # v (resident over Lq tiles)
            ],
            out_specs=(
                pl.BlockSpec((BB, TQ, Dv), lambda b, i: (b, i, 0)),      # context
                pl.BlockSpec((BB, TQ, Lk_pad), lambda b, i: (b, i, 0)),  # attn (lane-dense, 128-mult)
            ),
        ),
        compiler_params=pltpu.CompilerParams(
            dimension_semantics=("parallel", "parallel"),
            vmem_limit_bytes=32 * 1024 * 1024,
        ),
    )(pe_bias, q, k, v)

    if pad:
        attn = attn[:, :, :Lk]

    # NOTE: the module's API returns the full attention matrix, so a flash-style
    # (never-materialized attn) restructure is not applicable here.
    # TODO(synk): the transposed-view epilogue stays in XLA (Lq < 128 in the demo); for
    # large Lq it could be fused by writing context pre-transposed through the out_spec.
    context_out = jnp.transpose(context, (0, 2, 1)).reshape(B, -1, n_heads * d_v)
    return context_out, attn


def reference_forward(q, k, v, W_q, W_k, pe, *, d_k, d_v, n_heads):
    """Pure-JAX reference mirroring the PyTorch module line by line."""
    B, Lq, D = q.shape
    Lk = k.shape[1]
    scale_factor = np.sqrt(2 * d_k)
    scores = jnp.einsum("bqd,bkd->bqk", q, k)
    q_pe = jnp.ones((1, D), jnp.float32) @ W_q.T
    k_pe = pe[:Lk] @ W_k.T
    pe_attention = q_pe @ k_pe.T
    scores = scores + pe_attention[None, :, :]
    scores = scores / scale_factor
    attn = jax.nn.softmax(scores, axis=-1)
    context = jnp.einsum("bqk,bkd->bqd", attn, v)
    context = jnp.transpose(context, (0, 2, 1)).reshape(B, -1, n_heads * d_v)
    return context, attn


if __name__ == "__main__":
    # Module hyperparameters (small, consistent with the module's constructor).
    d_model = 32
    n_heads = 4
    d_k = d_model // n_heads   # 8
    d_v = d_model // n_heads   # 8
    max_len = 10000            # as in the module
    B, Lq, Lk = 2, 8, 8

    key = jax.random.PRNGKey(0)
    k_q, k_k, k_v, k_wq, k_wk, k_pe = jax.random.split(key, 6)

    # Inputs.
    q = jax.random.normal(k_q, (B, Lq, d_model), dtype=jnp.float32)
    kk = jax.random.normal(k_k, (B, Lk, d_model), dtype=jnp.float32)
    v = jax.random.normal(k_v, (B, Lk, d_model), dtype=jnp.float32)

    # Deterministic parameter init (shapes per __init__; synthetic values).
    lim = 1.0 / math.sqrt(d_model)
    W_q = jax.random.uniform(k_wq, (d_model, d_model), minval=-lim, maxval=lim, dtype=jnp.float32)
    W_k = jax.random.uniform(k_wk, (d_model, d_model), minval=-lim, maxval=lim, dtype=jnp.float32)
    pe = jax.random.uniform(k_pe, (max_len, d_model), minval=-0.1, maxval=0.1, dtype=jnp.float32)

    ctx_ref_, attn_ref_ = reference_forward(q, kk, v, W_q, W_k, pe,
                                            d_k=d_k, d_v=d_v, n_heads=n_heads)

    # f32 MXU path (default). Tolerances account for the EUP approx reciprocal,
    # which scales each softmax row by (1 + eps) with |eps| well below 1e-2.
    context, attn = mha_tupe_forward(q, kk, v, W_q, W_k, pe,
                                     d_k=d_k, d_v=d_v, n_heads=n_heads)
    jax.block_until_ready((context, attn))
    np.testing.assert_allclose(np.asarray(attn), np.asarray(attn_ref_), rtol=1e-2, atol=1e-5)
    np.testing.assert_allclose(np.asarray(context), np.asarray(ctx_ref_), rtol=1e-2, atol=1e-4)

    # bf16 MXU path (v6e/v7x fast path): coarse sanity check (bf16 inputs, f32 accumulation).
    ctx_bf, attn_bf = mha_tupe_forward(q, kk, v, W_q, W_k, pe,
                                       d_k=d_k, d_v=d_v, n_heads=n_heads, use_bf16_mxu=True)
    jax.block_until_ready((ctx_bf, attn_bf))
    assert np.isfinite(np.asarray(ctx_bf)).all() and np.isfinite(np.asarray(attn_bf)).all()
    np.testing.assert_allclose(np.asarray(attn_bf), np.asarray(attn_ref_), rtol=0.0, atol=0.08)

    print("KERNEL_OK")
</pallas_src>

<mosaic_0001>
module attributes {stable_mosaic.version = 11 : i64} {
  func.func @attn_kernel(%arg0: i32, %arg1: i32, %arg2: memref<1x128xf32, #tpu.memory_space<vmem>>, %arg3: memref<2x8x32xf32, #tpu.memory_space<vmem>>, %arg4: memref<2x128x32xf32, #tpu.memory_space<vmem>>, %arg5: memref<2x128x32xf32, #tpu.memory_space<vmem>>, %arg6: memref<2x8x32xf32, #tpu.memory_space<vmem>>, %arg7: memref<2x8x128xf32, #tpu.memory_space<vmem>>) attributes {dimension_semantics = [#tpu.dimension_semantics<parallel>, #tpu.dimension_semantics<parallel>], iteration_bounds = array<i64: 1, 1>, scalar_prefetch = 0 : i64, scratch_operands = 0 : i64, tpu.core_type = #tpu.core_type<tc>, window_params = [{pipeline_mode = #tpu.pipeline_mode<synchronous>, transform_indices = @transform_0, window_bounds = array<i64: 1, 128>}, {transform_indices = @transform_1, window_bounds = array<i64: 2, 8, 32>}, {transform_indices = @transform_2, window_bounds = array<i64: 2, 128, 32>}, {transform_indices = @transform_3, window_bounds = array<i64: 2, 128, 32>}, {transform_indices = @transform_4, window_bounds = array<i64: 2, 8, 32>}, {transform_indices = @transform_5, window_bounds = array<i64: 2, 8, 128>}]} {
    %c0 = arith.constant 0 : index
    %c0_0 = arith.constant 0 : index
    %c0_1 = arith.constant 0 : index
    %0 = vector.load %arg3[%c0, %c0_0, %c0_1] : memref<2x8x32xf32, #tpu.memory_space<vmem>>, vector<2x8x32xf32>
    %c0_2 = arith.constant 0 : index
    %c0_3 = arith.constant 0 : index
    %c0_4 = arith.constant 0 : index
    %1 = vector.load %arg4[%c0_2, %c0_3, %c0_4] : memref<2x128x32xf32, #tpu.memory_space<vmem>>, vector<2x128x32xf32>
    %c0_5 = arith.constant 0 : index
    %c0_6 = arith.constant 0 : index
    %c0_7 = arith.constant 0 : index
    %2 = vector.load %arg5[%c0_5, %c0_6, %c0_7] : memref<2x128x32xf32, #tpu.memory_space<vmem>>, vector<2x128x32xf32>
    %c0_8 = arith.constant 0 : index
    %c0_9 = arith.constant 0 : index
    %3 = vector.load %arg2[%c0_8, %c0_9] : memref<1x128xf32, #tpu.memory_space<vmem>>, vector<1x128xf32>
    %cst = arith.constant dense<0.000000e+00> : vector<2x8x128xf32>
    %4 = tpu.matmul %0, %1, %cst {dimension_numbers = #tpu.dot_dimension_numbers<[2], [2], [1], [1], [0, 0, 0, 1, 1, 1], [0], [0]>} : vector<2x8x32xf32>, vector<2x128x32xf32>, vector<2x8x128xf32> -> vector<2x8x128xf32>
    %cst_10 = arith.constant 2.500000e-01 : f32
    %5 = vector.broadcast %cst_10 : f32 to vector<2x8x128xf32>
    %6 = arith.mulf %4, %5 : vector<2x8x128xf32>
    %7 = vector.shape_cast %3 : vector<1x128xf32> to vector<1x1x128xf32>
    %8 = vector.broadcast %7 : vector<1x1x128xf32> to vector<2x8x128xf32>
    %9 = arith.addf %6, %8 : vector<2x8x128xf32>
    %cst_11 = arith.constant dense<0xFF800000> : vector<2x8xf32>
    %10 = vector.multi_reduction <maximumf>, %9, %cst_11 [2] : vector<2x8x128xf32> to vector<2x8xf32>
    %11 = vector.shape_cast %10 : vector<2x8xf32> to vector<2x8x1xf32>
    %12 = vector.broadcast %11 : vector<2x8x1xf32> to vector<2x8x128xf32>
    %13 = arith.subf %9, %12 : vector<2x8x128xf32>
    %14 = math.exp %13 : vector<2x8x128xf32>
    %cst_12 = arith.constant dense<0.000000e+00> : vector<2x8xf32>
    %15 = vector.multi_reduction <add>, %14, %cst_12 [2] : vector<2x8x128xf32> to vector<2x8xf32>
    %16 = vector.shape_cast %15 : vector<2x8xf32> to vector<2x8x1xf32>
    %17 = tpu.reciprocal %16 {approx = true} : vector<2x8x1xf32> -> vector<2x8x1xf32>
    %18 = vector.broadcast %17 : vector<2x8x1xf32> to vector<2x8x128xf32>
    %19 = arith.mulf %14, %18 : vector<2x8x128xf32>
    %c0_13 = arith.constant 0 : index
    %c0_14 = arith.constant 0 : index
    %c0_15 = arith.constant 0 : index
    %20 = vector.load %arg7[%c0_13, %c0_14, %c0_15] : memref<2x8x128xf32, #tpu.memory_space<vmem>>, vector<2x8x128xf32>
    tpu.vector_store %arg7[%c0_13, %c0_14, %c0_15], %19 {strides = array<i32>} : memref<2x8x128xf32, #tpu.memory_space<vmem>>, vector<2x8x128xf32>,
    %cst_16 = arith.constant dense<0.000000e+00> : vector<2x8x32xf32>
    %21 = tpu.matmul %19, %2, %cst_16 {dimension_numbers = #tpu.dot_dimension_numbers<[2], [1], [1], [2], [0, 0, 0, 1, 1, 2], [0], [0]>} : vector<2x8x128xf32>, vector<2x128x32xf32>, vector<2x8x32xf32> -> vector<2x8x32xf32>
    %c0_17 = arith.constant 0 : index
    %c0_18 = arith.constant 0 : index
    %c0_19 = arith.constant 0 : index
    %22 = vector.load %arg6[%c0_17, %c0_18, %c0_19] : memref<2x8x32xf32, #tpu.memory_space<vmem>>, vector<2x8x32xf32>
    tpu.vector_store %arg6[%c0_17, %c0_18, %c0_19], %21 {strides = array<i32>} : memref<2x8x32xf32, #tpu.memory_space<vmem>>, vector<2x8x32xf32>,
    return
  }
  func.func @transform_0(%arg0: i32, %arg1: i32) -> (i32, i32) {
    %c0_i32 = arith.constant 0 : i32
    %c0_i32_0 = arith.constant 0 : i32
    %c0_i32_1 = arith.constant 0 : i32
    return %c0_i32, %c0_i32_0 : i32, i32
  }
  func.func @transform_1(%arg0: i32, %arg1: i32) -> (i32, i32, i32) {
    %c0_i32 = arith.constant 0 : i32
    %c0_i32_0 = arith.constant 0 : i32
    return %arg0, %arg1, %c0_i32 : i32, i32, i32
  }
  func.func @transform_2(%arg0: i32, %arg1: i32) -> (i32, i32, i32) {
    %c0_i32 = arith.constant 0 : i32
    %c0_i32_0 = arith.constant 0 : i32
    %c0_i32_1 = arith.constant 0 : i32
    return %arg0, %c0_i32, %c0_i32_0 : i32, i32, i32
  }
  func.func @transform_3(%arg0: i32, %arg1: i32) -> (i32, i32, i32) {
    %c0_i32 = arith.constant 0 : i32
    %c0_i32_0 = arith.constant 0 : i32
    %c0_i32_1 = arith.constant 0 : i32
    return %arg0, %c0_i32, %c0_i32_0 : i32, i32, i32
  }
  func.func @transform_4(%arg0: i32, %arg1: i32) -> (i32, i32, i32) {
    %c0_i32 = arith.constant 0 : i32
    %c0_i32_0 = arith.constant 0 : i32
    return %arg0, %arg1, %c0_i32 : i32, i32, i32
  }
  func.func @transform_5(%arg0: i32, %arg1: i32) -> (i32, i32, i32) {
    %c0_i32 = arith.constant 0 : i32
    %c0_i32_0 = arith.constant 0 : i32
    return %arg0, %arg1, %c0_i32 : i32, i32, i32
  }
}

</mosaic_0001>

<bundles_post_ra>
// kernel: tpu_custom_call.1
= control target key start
LH: loop header
LB: loop body
LE: loop exit
PB: predicated region body
PF: predicated region fallthrough
CT: control target
= control target key end

     0   :  { %11 = vsyncpa [#allocation3], 0  ;;  %vm88_vm0 = vcmask 261120   ;;  %v953_v3 = vmov 0.0|0.0   ;;  %vm954_vm2 = vmmov 0   ;;  %v955_v8 = vmov 0.0   ;;  %s1297_s0 = inlined_call_operand.vmem [shape: f32[1,128], index: 0, kind: input, shape index: {}]   ;;  %s1298_s1 = inlined_call_operand.vmem [shape: f32[2,8,32], index: 1, kind: input, shape index: {}]   ;;  %s1299_s2 = inlined_call_operand.vmem [shape: f32[2,128,32], index: 2, kind: input, shape index: {}]   ;;  %s1300_s3 = inlined_call_operand.vmem [shape: f32[2,128,32], index: 3, kind: input, shape index: {}]   ;;  %s1301_s4 = inlined_call_operand.hbm [shape: f32[2,8,32], index: 4, kind: output, shape index: {0}]   ;;  %s1302_s5 = inlined_call_operand.hbm [shape: f32[2,8,128], index: 5, kind: output, shape index: {1}]  }
   0x1   :  { %v23_v0 = vld [vmem:[%s1299_s2] sm:$0xff]  ;;  %v24_v1 = vld [vmem:[%s1299_s2 + $0x8] sm:$0xff]  ;;  %778 = vmatprep.subr.bf16.mxu0 %v953_v3  ;;  %vm1002_vm1 = vmpackc.low %vm88_vm0, %vm88_vm0  ;;  %810 = vmatprep.subr.bf16.mxu1 %v953_v3 }
   0x2   :  { %v39_v2 = vld [vmem:[%s1299_s2 + $0x80] sm:$0xff]  ;;  %v779_v4 = vpack.c.bf16 %v24_v1, %v23_v0  ;;  %v40_v6 = vld [vmem:[%s1299_s2 + $0x88] sm:$0xff]  ;;  %670 = vmatprep.mubr.msk.f32.mxu0 %vm954_vm2, %v955_v8  ;;  %705 = vmatprep.mubr.msk.f32.mxu1 %vm954_vm2, %v955_v8  ;;  %v25_v9 = vld [vmem:[%s1299_s2 + $0x10] sm:$0xff] }
   0x3   :  { %v811_v7 = vpack.c.bf16 %v40_v6, %v39_v2  ;;  %v26_v10 = vld [vmem:[%s1299_s2 + $0x18] sm:$0xff]  ;;  %v41_v11 = vld [vmem:[%s1299_s2 + $0x90] sm:$0xff] }
   0x4   :  { %781 = vmatpush3.bf16.xpose.msk.msra.mxu0 %vm1002_vm1, %v779_v4  ;;  %v42_v12 = vld [vmem:[%s1299_s2 + $0x98] sm:$0xff]  ;;  %v783_v13 = vpack.c.bf16 %v26_v10, %v25_v9 }
   0x5   :  { %813 = vmatpush3.bf16.xpose.msk.msra.mxu1 %vm1002_vm1, %v811_v7  ;;  %782 = vmatprep.subr.bf16.mxu0 %v953_v3  ;;  %v815_v14 = vpack.c.bf16 %v42_v12, %v41_v11 }
   0x6   :  { %814 = vmatprep.subr.bf16.mxu1 %v953_v3 }
   0xc   :  { %785 = vmatpush3.bf16.xpose.msk.msra.mxu0 %vm1002_vm1, %v783_v13 }
   0xd   :  { %12 = vsyncpa [#allocation5], 0  ;;  %817 = vmatpush3.bf16.xpose.msk.msra.mxu1 %vm1002_vm1, %v815_v14  ;;  %786 = vmatprep.subr.bf16.mxu0 %v953_v3  ;;  %v27_v15 = vld [vmem:[%s1299_s2 + $0x20] sm:$0xff]  ;;  %v28_v16 = vld [vmem:[%s1299_s2 + $0x28] sm:$0xff]  ;;  %s956_s18 = smov [#allocation4]  }
   0xe   :  { %818 = vmatprep.subr.bf16.mxu1 %v953_v3  ;;  %v43_v17 = vld [vmem:[%s1299_s2 + $0xa0] sm:$0xff]  ;;  %v44_v18 = vld [vmem:[%s1299_s2 + $0xa8] sm:$0xff]  ;;  %v787_v19 = vpack.c.bf16 %v28_v16, %v27_v15  ;;  %v29_v21 = vld [vmem:[%s1299_s2 + $0x30] sm:$0xff]  ;;  %s520_s19 = sshll.u32 %s956_s18, 4  ;;  %s521_s19 = int_to_ptr.vmem [resolvable:$true] %s520_s19 }
   0xf   :  { %v819_v20 = vpack.c.bf16 %v44_v18, %v43_v17  ;;  %v30_v22 = vld [vmem:[%s1299_s2 + $0x38] sm:$0xff]  ;;  %v45_v23 = vld [vmem:[%s1299_s2 + $0xb0] sm:$0xff]  ;;  %v31_v27 = vld [vmem:[%s1299_s2 + $0x40] sm:$0xff]  ;;  %p910_p1 = scmp.lt.s32.totalorder %s521_s19, %s521_s19 }
  0x10   :  { %v46_v24 = vld [vmem:[%s1299_s2 + $0xb8] sm:$0xff]  ;;  %v791_v25 = vpack.c.bf16 %v30_v22, %v29_v21  ;;  %v32_v28 = vld [vmem:[%s1299_s2 + $0x48] sm:$0xff]  ;;  %v47_v29 = vld [vmem:[%s1299_s2 + $0xc0] sm:$0xff] }
  0x11   :  { %v823_v26 = vpack.c.bf16 %v46_v24, %v45_v23  ;;  %v48_v30 = vld [vmem:[%s1299_s2 + $0xc8] sm:$0xff]  ;;  %v795_v31 = vpack.c.bf16 %v32_v28, %v31_v27  ;;  %v33_v33 = vld [vmem:[%s1299_s2 + $0x50] sm:$0xff]  ;;  %v34_v34 = vld [vmem:[%s1299_s2 + $0x58] sm:$0xff] }
  0x12   :  { %v827_v32 = vpack.c.bf16 %v48_v30, %v47_v29  ;;  %v49_v35 = vld [vmem:[%s1299_s2 + $0xd0] sm:$0xff]  ;;  %v50_v36 = vld [vmem:[%s1299_s2 + $0xd8] sm:$0xff]  ;;  %v799_v37 = vpack.c.bf16 %v34_v34, %v33_v33  ;;  %v35_v39 = vld [vmem:[%s1299_s2 + $0x60] sm:$0xff] }
  0x13   :  { %v831_v38 = vpack.c.bf16 %v50_v36, %v49_v35  ;;  %v36_v40 = vld [vmem:[%s1299_s2 + $0x68] sm:$0xff]  ;;  %v51_v41 = vld [vmem:[%s1299_s2 + $0xe0] sm:$0xff]  ;;  %v37_v45 = vld [vmem:[%s1299_s2 + $0x70] sm:$0xff] }
  0x14   :  { %789 = vmatpush3.bf16.xpose.msk.msra.mxu0 %vm1002_vm1, %v787_v19  ;;  %v52_v42 = vld [vmem:[%s1299_s2 + $0xe8] sm:$0xff]  ;;  %v803_v43 = vpack.c.bf16 %v36_v40, %v35_v39  ;;  %v38_v46 = vld [vmem:[%s1299_s2 + $0x78] sm:$0xff]  ;;  %v53_v47 = vld [vmem:[%s1299_s2 + $0xf0] sm:$0xff] }
  0x15   :  { %821 = vmatpush3.bf16.xpose.msk.msra.mxu1 %vm1002_vm1, %v819_v20  ;;  %790 = vmatprep.subr.bf16.mxu0 %v953_v3  ;;  %v835_v44 = vpack.c.bf16 %v52_v42, %v51_v41  ;;  %v54_v48 = vld [vmem:[%s1299_s2 + $0xf8] sm:$0xff]  ;;  %v807_v49 = vpack.c.bf16 %v38_v46, %v37_v45  ;;  %v21_v51 = vld [vmem:[%s1298_s1] sm:$0xff]  ;;  %v22_v52 = vld [vmem:[%s1298_s1 + $0x8] sm:$0xff] }
  0x16   :  { %822 = vmatprep.subr.bf16.mxu1 %v953_v3  ;;  %v839_v50 = vpack.c.bf16 %v54_v48, %v53_v47  ;;  %v569_v54 = vld [vmem:[%s1297_s0] ss:$0 sm:$0xff]  ;;  %v56_v63 = vld [vmem:[%s1300_s3 + $0x8] sm:$0xff]  ;;  %v57_v0 = vld [vmem:[%s1300_s3 + $0x10] sm:$0xff] }
  0x17   :  { %v55_v62 = vld [vmem:[%s1300_s3] sm:$0xff]  ;;  %v58_v2 = vld [vmem:[%s1300_s3 + $0x18] sm:$0xff]  ;;  %v72_v5 = vld [vmem:[%s1300_s3 + $0x88] sm:$0xff] }
  0x18   :  { %v843_v1 = vpack.c.bf16 %v56_v63, %v55_v62  ;;  %v71_v4 = vld [vmem:[%s1300_s3 + $0x80] sm:$0xff]  ;;  %v73_v7 = vld [vmem:[%s1300_s3 + $0x90] sm:$0xff]  ;;  %v74_v9 = vld [vmem:[%s1300_s3 + $0x98] sm:$0xff] }
  0x19   :  { %v867_v6 = vpack.c.bf16 %v72_v5, %v71_v4  ;;  %v59_v10 = vld [vmem:[%s1300_s3 + $0x20] sm:$0xff]  ;;  %v60_v11 = vld [vmem:[%s1300_s3 + $0x28] sm:$0xff]  ;;  %v870_v12 = vpack.c.bf16 %v74_v9, %v73_v7  ;;  %v61_v16 = vld [vmem:[%s1300_s3 + $0x30] sm:$0xff] }
  0x1a   :  { %v75_v13 = vld [vmem:[%s1300_s3 + $0xa0] sm:$0xff]  ;;  %v76_v14 = vld [vmem:[%s1300_s3 + $0xa8] sm:$0xff]  ;;  %v849_v15 = vpack.c.bf16 %v60_v11, %v59_v10  ;;  %v62_v17 = vld [vmem:[%s1300_s3 + $0x38] sm:$0xff] }
  0x1b   :  { %v873_v18 = vpack.c.bf16 %v76_v14, %v75_v13  ;;  %v77_v19 = vld [vmem:[%s1300_s3 + $0xb0] sm:$0xff]  ;;  %v78_v20 = vld [vmem:[%s1300_s3 + $0xb8] sm:$0xff]  ;;  %v852_v21 = vpack.c.bf16 %v62_v17, %v61_v16  ;;  %v63_v22 = vld [vmem:[%s1300_s3 + $0x40] sm:$0xff] }
  0x1c   :  { %793 = vmatpush3.bf16.xpose.msk.msra.mxu0 %vm1002_vm1, %v791_v25  ;;  %v64_v23 = vld [vmem:[%s1300_s3 + $0x48] sm:$0xff]  ;;  %v876_v24 = vpack.c.bf16 %v78_v20, %v77_v19  ;;  %v65_v34 = vld [vmem:[%s1300_s3 + $0x50] sm:$0xff]  ;;  %v66_v35 = vld [vmem:[%s1300_s3 + $0x58] sm:$0xff] }
  0x1d   :  { %825 = vmatpush3.bf16.xpose.msk.msra.mxu1 %vm1002_vm1, %v823_v26  ;;  %794 = vmatprep.subr.bf16.mxu0 %v953_v3  ;;  %v855_v25 = vpack.c.bf16 %v64_v23, %v63_v22  ;;  %v79_v36 = vld [vmem:[%s1300_s3 + $0xc0] sm:$0xff]  ;;  %v68_v41 = vld [vmem:[%s1300_s3 + $0x68] sm:$0xff]  ;;  %v81_v42 = vld [vmem:[%s1300_s3 + $0xd0] sm:$0xff] }
  0x1e   :  { %826 = vmatprep.subr.bf16.mxu1 %v953_v3  ;;  %v67_v40 = vld [vmem:[%s1300_s3 + $0x60] sm:$0xff]  ;;  %v69_v45 = vld [vmem:[%s1300_s3 + $0x70] sm:$0xff]  ;;  %v70_v46 = vld [vmem:[%s1300_s3 + $0x78] sm:$0xff] }
  0x1f   :  { %v83_v48 = vld [vmem:[%s1300_s3 + $0xe0] sm:$0xff] }
  0x24   :  { %797 = vmatpush3.bf16.xpose.msk.msra.mxu0 %vm1002_vm1, %v795_v31 }
  0x25   :  { %829 = vmatpush3.bf16.xpose.msk.msra.mxu1 %vm1002_vm1, %v827_v32  ;;  %798 = vmatprep.subr.bf16.mxu0 %v953_v3 }
  0x26   :  { %830 = vmatprep.subr.bf16.mxu1 %v953_v3 }
  0x2c   :  { %801 = vmatpush3.bf16.xpose.msk.msra.mxu0 %vm1002_vm1, %v799_v37  ;;  %v858_v37 = vpack.c.bf16 %v66_v35, %v65_v34 }
  0x2d   :  { %833 = vmatpush3.bf16.xpose.msk.msra.mxu1 %vm1002_vm1, %v831_v38  ;;  %802 = vmatprep.subr.bf16.mxu0 %v953_v3  ;;  %v80_v38 = vld [vmem:[%s1300_s3 + $0xc8] sm:$0xff] }
  0x2e   :  { %834 = vmatprep.subr.bf16.mxu1 %v953_v3  ;;  %v879_v39 = vpack.c.bf16 %v80_v38, %v79_v36 }
  0x34   :  { %805 = vmatpush3.bf16.xpose.msk.msra.mxu0 %vm1002_vm1, %v803_v43  ;;  %v861_v43 = vpack.c.bf16 %v68_v41, %v67_v40 }
  0x35   :  { %837 = vmatpush3.bf16.xpose.msk.msra.mxu1 %vm1002_vm1, %v835_v44  ;;  %806 = vmatprep.subr.bf16.mxu0 %v953_v3  ;;  %v82_v44 = vld [vmem:[%s1300_s3 + $0xd8] sm:$0xff] }
  0x36   :  { %838 = vmatprep.subr.bf16.mxu1 %v953_v3  ;;  %v882_v47 = vpack.c.bf16 %v82_v44, %v81_v42 }
  0x3c   :  { %809 = vmatpush3.bf16.xpose.msk.msra.mxu0 %vm1002_vm1, %v807_v49  ;;  %v84_v49 = vld [vmem:[%s1300_s3 + $0xe8] sm:$0xff] }
  0x3d   :  { %841 = vmatpush3.bf16.xpose.msk.msra.mxu1 %vm1002_vm1, %v839_v50  ;;  %842 = vmatprep.subr.bf16.mxu0 %v953_v3  ;;  %v864_v50 = vpack.c.bf16 %v70_v46, %v69_v45 }
  0x3e   :  { %866 = vmatprep.subr.bf16.mxu1 %v953_v3 }
  0x43   :  { %671 = vmatmul.mubr.msk.f32.vlgmr.msra.gmra.mrb[0].mxu0 %vm88_vm0, %v21_v51  ;;  %v885_v51 = vpack.c.bf16 %v84_v49, %v83_v48 }
  0x44   :  { %706 = vmatmul.mubr.msk.f32.vlgmr.msra.gmra.mrb[0].mxu1 %vm88_vm0, %v22_v52  ;;  %740 = vmatprep.mubr.msk.f32.mxu0 %vm954_vm2, %v955_v8  ;;  %v85_v52 = vld [vmem:[%s1300_s3 + $0xf0] sm:$0xff] }
  0x45   :  { %775 = vmatprep.mubr.msk.f32.mxu1 %vm954_vm2, %v955_v8  ;;  %844 = vmatpush3.bf16.msra.mxu0 %v843_v1  ;;  %v846_v8 = vpack.c.bf16 %v58_v2, %v57_v0 }
  0x46   :  { %845 = vmatprep.subr.bf16.mxu0 %v953_v3  ;;  %868 = vmatpush3.bf16.msra.mxu1 %v867_v6 }
  0x47   :  { %869 = vmatprep.subr.bf16.mxu1 %v953_v3 }
  0x49   :  { %847 = vmatpush3.bf16.msra.mxu0 %v846_v8 }
  0x4a   :  { %848 = vmatprep.subr.bf16.mxu0 %v953_v3  ;;  %871 = vmatpush3.bf16.msra.mxu1 %v870_v12 }
  0x4b   :  { %872 = vmatprep.subr.bf16.mxu1 %v953_v3 }
  0x4d   :  { %850 = vmatpush3.bf16.msra.mxu0 %v849_v15 }
  0x4e   :  { %851 = vmatprep.subr.bf16.mxu0 %v953_v3  ;;  %874 = vmatpush3.bf16.msra.mxu1 %v873_v18 }
  0x4f   :  { %875 = vmatprep.subr.bf16.mxu1 %v953_v3 }
  0x51   :  { %853 = vmatpush3.bf16.msra.mxu0 %v852_v21 }
  0x52   :  { %854 = vmatprep.subr.bf16.mxu0 %v953_v3  ;;  %877 = vmatpush3.bf16.msra.mxu1 %v876_v24 }
  0x53   :  { %878 = vmatprep.subr.bf16.mxu1 %v953_v3 }
  0x55   :  { %856 = vmatpush3.bf16.msra.mxu0 %v855_v25 }
  0x56   :  { %857 = vmatprep.subr.bf16.mxu0 %v953_v3  ;;  %880 = vmatpush3.bf16.msra.mxu1 %v879_v39 }
  0x57   :  { %881 = vmatprep.subr.bf16.mxu1 %v953_v3 }
  0x59   :  { %859 = vmatpush3.bf16.msra.mxu0 %v858_v37 }
  0x5a   :  { %860 = vmatprep.subr.bf16.mxu0 %v953_v3  ;;  %883 = vmatpush3.bf16.msra.mxu1 %v882_v47 }
  0x5b   :  { %884 = vmatprep.subr.bf16.mxu1 %v953_v3 }
  0x5d   :  { %862 = vmatpush3.bf16.msra.mxu0 %v861_v43 }
  0x5e   :  { %863 = vmatprep.subr.bf16.mxu0 %v953_v3  ;;  %886 = vmatpush3.bf16.msra.mxu1 %v885_v51 }
  0x5f   :  { %887 = vmatprep.subr.bf16.mxu1 %v953_v3 }
  0x61   :  { %865 = vmatpush3.bf16.msra.mxu0 %v864_v50 }
 0x116   :  { %v206_v53 = vpop.f32.mrb[0].mxu0 }
 0x117   :  { %v331_v55 = vmul.f32 0.25, %v206_v53  ;;  %v672_v56 = vpop.f32.mrb[1].mxu0  ;;  %v327_v57 = vpop.f32.mrb[0].mxu1  ;;  %v86_v53 = vld [vmem:[%s1300_s3 + $0xf8] sm:$0xff]  ;;  %s905_s3 = scalar_lea.vmem %s521_s19, 256 }
 0x118   :  { %v332_v58 = vmul.f32 0.25, %v327_v57  ;;  %v707_v59 = vpop.f32.mrb[1].mxu1  ;;  %p906_p0 = scmp.ne.s32.totalorder %s521_s19, %s905_s3  ;;  %p911_p2 = scmp.lt.s32.totalorder %s905_s3, %s905_s3 }
 0x119   :  { %v339_v60 = vadd.f32 %v569_v54, %v331_v55 }
 0x11a   :  { %v340_v61 = vadd.f32 %v569_v54, %v332_v58  ;;  %v888_v54 = vpack.c.bf16 %v86_v53, %v85_v52  ;;  %p912_p3 = por %p911_p2, %p910_p1 }
 0x11b   :  { %341 = vmax.xlane.f32.xlu0 %v339_v60 }
 0x11c   :  { %889 = vmatpush3.bf16.msra.mxu1 %v888_v54  ;;  %p913_p4 = pnand %p912_p3, %p906_p0 }
 0x11f   :  { %343 = vmax.xlane.f32.xlu0 %v340_v61 }
 0x1a8   :  { %v342_v26 = vpop.xlane.xlu0 %341 }
 0x1a9   :  { %v345_v27 = vsub.f32 %v339_v60, %v342_v26 }
 0x1ab   :  { %v347_v28 = vmul.f32 1.442695, %v345_v27 }
 0x1ac   :  { %v344_v29 = vpop.xlane.xlu0 %343 }
 0x1ad   :  { %897 = vpow2.f32 %v347_v28  ;;  %v346_v30 = vsub.f32 %v340_v61, %v344_v29 }
 0x1af   :  { %v349_v31 = vmul.f32 1.442695, %v346_v30 }
 0x1b1   :  { %899 = vpow2.f32 %v349_v31 }
 0x1b7   :  { %v898_v32 = vpop.eup %897 }
 0x1b8   :  { %351 = vadd.xlane.f32.xlu1 %v898_v32 }
 0x1bb   :  { %v900_v33 = vpop.eup %899 }
 0x1bc   :  { %353 = vadd.xlane.f32.xlu1 %v900_v33 }
 0x245   :  { %v352_v55 = vpop.xlane.xlu1 %351 }
 0x246   :  { %901 = vrcp.f32 %v352_v55 }
 0x249   :  { %v354_v56 = vpop.xlane.xlu1 %353 }
 0x24a   :  { %903 = vrcp.f32 %v354_v56 }
 0x250   :  { %v902_v57 = vpop.eup %901 }
 0x251   :  { %v357_v58 = vmul.f32 %v902_v57, %v898_v32 }
 0x253   :  { %741 = vmatmul.mubr.f32.vlgmr.msra.gmra.mrb[2].mxu0 %v357_v58  ;;  %359 = vst [vmem:[#allocation4] sm:$0xff] %v357_v58 }
 0x254   :  { %v904_v59 = vpop.eup %903 }
 0x255   :  { %v358_v60 = vmul.f32 %v904_v59, %v900_v33 }
 0x257   :  { %776 = vmatmul.mubr.f32.vlgmr.msra.gmra.mrb[2].mxu1 %v358_v60  ;;  %360 = vst [vmem:[#allocation4 + $0x8] sm:$0xff] %v358_v60 }
 0x258   :  { %916 = shalt.err (!%p913_p4)
}
 0x259   :  { %s917_s22 = scalar_lea.hbm %s1302_s5, 256 }
 0x25a   :  { %p918_p5 = scmp.ne.s32.totalorder %s1302_s5, %s917_s22  ;;  %p921_p6 = scmp.lt.u32.totalorder %s917_s22, %s1302_s5 }
 0x25c   :  { %p923_p7 = pnand %p921_p6, %p918_p5 }
 0x25e   :  { %926 = shalt.err (!%p923_p7)
}
 0x25f   :  { %s957_s27 = smov 128   ;;  %s958_s28 = smov 8  }
 0x260   :  { %526 = dma.vmem_to_hbm [thread:$0]  %s521_s19, 256, %s1302_s5, [#allocation5], %s957_s27, %s957_s27, %s958_s28  }
 0x261   :  { %s959_s6 = smov [#allocation2]  }
 0x262   :  { %s508_s7 = sshll.u32 %s959_s6, 4  ;;  %s509_s7 = int_to_ptr.vmem [resolvable:$true] %s508_s7 }
 0x263   :  { %s927_s8 = scalar_lea.vmem %s509_s7, 256  ;;  %p932_p9 = scmp.lt.s32.totalorder %s509_s7, %s509_s7 }
 0x264   :  { %p928_p8 = scmp.ne.s32.totalorder %s509_s7, %s927_s8  ;;  %p933_p10 = scmp.lt.s32.totalorder %s927_s8, %s927_s8 }
 0x266   :  { %p934_p11 = por %p933_p10, %p932_p9 }
 0x268   :  { %p935_p12 = pnand %p934_p11, %p928_p8 }
 0x326   :  { %v427_v3 = vpop.f32.mrb[2].mxu0 }
 0x327   :  { %501 = vst.msk [vmem:[#allocation2] sm:$0xff] %vm88_vm0, %v427_v3  ;;  %v742_v61 = vpop.f32.mrb[3].mxu0 }
 0x32a   :  { %v497_v62 = vpop.f32.mrb[2].mxu1 }
 0x32b   :  { %502 = vst.msk [vmem:[#allocation2 + $0x8] sm:$0xff] %vm88_vm0, %v497_v62  ;;  %v777_v63 = vpop.f32.mrb[3].mxu1 }
 0x32c   :  { %938 = shalt.err (!%p935_p12)
}
 0x32d   :  { %s939_s10 = scalar_lea.hbm %s1301_s4, 256 }
 0x32e   :  { %p940_p13 = scmp.ne.s32.totalorder %s1301_s4, %s939_s10  ;;  %p943_p0 = scmp.lt.u32.totalorder %s939_s10, %s1301_s4 }
 0x330   :  { %p945_p1 = pnand %p943_p0, %p940_p13 }
 0x332   :  { %948 = shalt.err (!%p945_p1)
}
 0x333   :  { %514 = dma.vmem_to_hbm [thread:$0]  %s509_s7, 256, %s1301_s4, [#allocation3], %s957_s27, %s957_s27, %s958_s28  }
 0x334   :  { %949 = dma.done.wait [#allocation3], 256  }
 0x335   :  { %950 = vsyncadd [#allocation3], 4294967040 }
 0x336   :  { %951 = dma.done.wait [#allocation5], 256  }
 0x337   :  { %952 = vsyncadd [#allocation5], 4294967040 }
 0x338   :  { %533 = vsyncpa [#allocation3], 1 }
 0x339   :  { %534 = vsyncpa [#allocation5], 1 }

</bundles_post_ra>
